<compile_context>
chip_gen: v7x
topology: tpu7x:2x2x1
jax: 0.10.0
libtpu: 0.0.40
codegen_flags: <defaults>
</compile_context>

<pallas_src>
import functools

import jax
import jax.numpy as jnp
from jax.experimental import pallas as pl
from jax.experimental.pallas import tpu as pltpu


def _pick_batch_tile(batch):
    for bt in (512, 256, 128, 64, 32, 16, 8):
        if batch % bt == 0:
            return bt
    return batch  # small / odd batch: one full-size tile


# ----------------------------------------------------------------------------
# Fused kernel: teacher projection + base CE + confidence reweighting + distill
# ----------------------------------------------------------------------------
def _fused_distill_kernel(lab_ref, logit_ref, kd_ref, x_ref, w_ref, b_ref,
                          loss_ref, base_acc, ent_acc, dist_acc,
                          *, alpha, tau, dist_type, n_teachers, n_classes,
                          batch):
    T, C = n_teachers, n_classes
    step = pl.program_id(0)

    @pl.when(step == 0)
    def _init():
        base_acc[...] = jnp.zeros_like(base_acc)
        ent_acc[...] = jnp.zeros_like(ent_acc)
        dist_acc[...] = jnp.zeros_like(dist_acc)

    lane = jax.lax.broadcasted_iota(jnp.int32, (1, 128), 1)
    zero_row = jnp.zeros((1, 128), jnp.float32)

    logits = logit_ref[...].astype(jnp.float32)            # [Bt, C]
    bt = logits.shape[0]
    labels = lab_ref[...]                                  # [Bt, 1] int32
    col = jax.lax.broadcasted_iota(jnp.int32, (bt, C), 1)

    # ---- base cross-entropy partial: sum_b (lse(logits_b) - logits_b[y_b]) --
    m = jnp.max(logits, axis=-1, keepdims=True)
    lse = m + jnp.log(jnp.sum(jnp.exp(logits - m), axis=-1, keepdims=True))
    picked = jnp.sum(jnp.where(col == labels, logits, 0.0),
                     axis=-1, keepdims=True)
    ce_sum = jnp.sum(lse - picked, keepdims=True)          # [1, 1]
    base_acc[...] = base_acc[...] + jnp.where(lane == 0, ce_sum, zero_row)

    if dist_type != "none":
        kd = kd_ref[...].astype(jnp.float32)               # [Bt, C]

        # Teacher forward for this tile: one wide bf16 MXU matmul, f32 acc.
        t_all = jnp.dot(x_ref[...], w_ref[...],
                        preferred_element_type=jnp.float32) + b_ref[...]

        if dist_type == "soft":
            inv_tau = 1.0 / tau
            mk = jnp.max(kd, axis=-1, keepdims=True)
            sk = (kd - mk) * inv_tau
            ls_kd = sk - jnp.log(jnp.sum(jnp.exp(sk), axis=-1, keepdims=True))
        else:
            mk = jnp.max(kd, axis=-1, keepdims=True)
            lse_kd = mk + jnp.log(jnp.sum(jnp.exp(kd - mk),
                                          axis=-1, keepdims=True))

        ent_contrib = zero_row
        dist_contrib = zero_row
        for t in range(T):                                 # static, small T
            tl = t_all[:, t * C:(t + 1) * C]               # [Bt, C]
            mt = jnp.max(tl, axis=-1, keepdims=True)
            st = tl - mt
            et = jnp.exp(st)                               # single exp pass
            zt = jnp.sum(et, axis=-1, keepdims=True)
            log_zt = jnp.log(zt)
            # entropy per row: log z - sum(e*s)/z
            ent_rows = log_zt - jnp.sum(et * st, axis=-1, keepdims=True) / zt
            ent_sum = jnp.sum(ent_rows, keepdims=True)     # [1, 1]
            ent_contrib = jnp.where(lane == t, ent_sum, ent_contrib)

            if dist_type == "soft":
                st_tau = st * inv_tau                      # reuse row max
                et_tau = jnp.exp(st_tau)
                zt_tau = jnp.sum(et_tau, axis=-1, keepdims=True)
                ls_t = st_tau - jnp.log(zt_tau)
                p_t = et_tau * (1.0 / zt_tau)
                kl_sum = jnp.sum(p_t * (ls_t - ls_kd), keepdims=True)
                dist_contrib = jnp.where(lane == t, kl_sum, dist_contrib)
            else:  # hard: CE(kd, argmax(teacher)) per teacher, streamed
                is_max = tl >= mt
                amax = jnp.min(jnp.where(is_max, col.astype(jnp.float32),
                                         float(C)), axis=-1, keepdims=True)
                tgt_kd = jnp.sum(
                    jnp.where(col.astype(jnp.float32) == amax, kd, 0.0),
                    axis=-1, keepdims=True)
                ce_t = jnp.sum(lse_kd - tgt_kd, keepdims=True)
                dist_contrib = jnp.where(lane == t, ce_t, dist_contrib)

        ent_acc[...] = ent_acc[...] + ent_contrib
        dist_acc[...] = dist_acc[...] + dist_contrib

    @pl.when(step == pl.num_programs(0) - 1)
    def _finalize():
        base_loss = jnp.sum(base_acc[...], keepdims=True) / batch     # [1,1]
        if dist_type == "none":
            loss11 = base_loss
        else:
            tmask = lane < T
            ent = jnp.where(tmask, ent_acc[...], jnp.float32(-1e30))
            em = jnp.max(ent, keepdims=True)
            ew = jnp.where(tmask, jnp.exp(ent - em), 0.0)
            tw = ew / jnp.sum(ew, keepdims=True)           # teacher weights, lanes 0..T-1
            if dist_type == "soft":
                scale = (tau * tau) / (batch * C)
            else:
                scale = 1.0 / batch
            distill = jnp.sum(tw * dist_acc[...], keepdims=True) * scale
            loss11 = base_loss * (1.0 - alpha) + distill * alpha
        loss_ref[...] = jnp.where(lane == 0, loss11, zero_row)


def distillation_loss(x, outputs, outputs_kd, labels, teacher_w, teacher_b, *,
                      alpha, tau, distillation_type):
    assert distillation_type in ("none", "soft", "hard")
    B, C = outputs.shape
    T, D, _ = teacher_w.shape
    bt = _pick_batch_tile(B)
    n_tiles = B // bt

    labels2d = labels.astype(jnp.int32).reshape(B, 1)
    x_bf = x.astype(jnp.bfloat16)
    # Pack the T linear teachers into one [D, T*C] bf16 matrix (+ f32 bias row)
    w_all = jnp.transpose(teacher_w, (1, 0, 2)).reshape(D, T * C)
    w_all = w_all.astype(jnp.bfloat16)
    b_all = teacher_b.reshape(1, T * C).astype(jnp.float32)

    kernel = functools.partial(
        _fused_distill_kernel, alpha=float(alpha), tau=float(tau),
        dist_type=distillation_type, n_teachers=T, n_classes=C, batch=B)

    out = pl.pallas_call(
        kernel,
        out_shape=jax.ShapeDtypeStruct((1, 128), jnp.float32),
        grid_spec=pltpu.PrefetchScalarGridSpec(
            num_scalar_prefetch=0,
            grid=(n_tiles,),
            in_specs=[
                pl.BlockSpec((bt, 1), lambda i: (i, 0)),      # int labels
                pl.BlockSpec((bt, C), lambda i: (i, 0)),      # class-token logits
                pl.BlockSpec((bt, C), lambda i: (i, 0)),      # dist-token logits
                pl.BlockSpec((bt, D), lambda i: (i, 0)),      # teacher inputs
                pl.BlockSpec((D, T * C), lambda i: (0, 0)),   # packed teacher W (resident)
                pl.BlockSpec((1, T * C), lambda i: (0, 0)),   # packed teacher b (resident)
            ],
            out_specs=pl.BlockSpec((1, 128), lambda i: (0, 0)),
            scratch_shapes=[pltpu.VMEM((1, 128), jnp.float32) for _ in range(3)],
        ),
        compiler_params=pltpu.CompilerParams(
            dimension_semantics=("arbitrary",),   # reduction into accumulators
            vmem_limit_bytes=64 * 1024 * 1024,
        ),
    )(labels2d, outputs, outputs_kd, x_bf, w_all, b_all)
    return out[0, 0]


# ----------------------------------------------------------------------------
# Pure-JAX reference (mirrors the PyTorch forward) for a sanity check.
# ----------------------------------------------------------------------------
def reference_loss(x, outputs, outputs_kd, labels, teacher_w, teacher_b, *,
                   alpha, tau, distillation_type):
    B, C = outputs.shape
    T, D, _ = teacher_w.shape
    # Teacher logits with the same bf16-input / f32-accumulate semantics.
    w_all = jnp.transpose(teacher_w, (1, 0, 2)).reshape(D, T * C)
    t_all = jnp.dot(x.astype(jnp.bfloat16), w_all.astype(jnp.bfloat16),
                    preferred_element_type=jnp.float32)
    t_all = t_all + teacher_b.reshape(1, T * C)
    t = jnp.transpose(t_all.reshape(B, T, C), (1, 0, 2))        # [T, B, C]

    logp = jax.nn.log_softmax(outputs, axis=-1)
    base_loss = -jnp.mean(jnp.take_along_axis(logp, labels[:, None], axis=-1))
    if distillation_type == "none":
        return base_loss

    t_logp = jax.nn.log_softmax(t, axis=-1)
    neg_ent = -jnp.sum(jnp.exp(t_logp) * t_logp, axis=(1, 2))   # [T]
    w = jax.nn.softmax(neg_ent, axis=-1)

    if distillation_type == "soft":
        ls_kd = jax.nn.log_softmax(outputs_kd / tau, axis=-1)
        ls_t = jax.nn.log_softmax(t / tau, axis=-1)
        kl = jnp.sum(jnp.exp(ls_t) * (ls_t - ls_kd[None]), axis=(1, 2))
        distill = jnp.sum(w * kl) * (tau * tau) / (B * C)
    else:
        tgt = jnp.argmax(t, axis=-1)                            # [T, B]
        lse = jax.nn.logsumexp(outputs_kd, axis=-1)             # [B]
        picked = jnp.take_along_axis(
            jnp.broadcast_to(outputs_kd[None], (T, B, C)),
            tgt[..., None], axis=-1)[..., 0]
        ce_t = jnp.mean(lse[None] - picked, axis=-1)            # [T]
        distill = jnp.sum(w * ce_t)
    return base_loss * (1.0 - alpha) + distill * alpha


if __name__ == "__main__":
    B, D, C, T = 8, 32, 128, 2          # batch, features, classes, teachers
    alpha, tau = 0.5, 2.0

    key = jax.random.PRNGKey(0)
    k1, k2, k3, k4, k5, k6 = jax.random.split(key, 6)

    x = jax.random.normal(k1, (B, D), dtype=jnp.float32)           # teacher input
    outputs = jax.random.normal(k2, (B, C), dtype=jnp.float32)     # class-token logits
    outputs_kd = jax.random.normal(k3, (B, C), dtype=jnp.float32)  # dist-token logits
    labels = jax.random.randint(k4, (B,), 0, C)

    # Deterministic synthetic linear-teacher parameters.
    teacher_w = jax.random.normal(k5, (T, D, C), dtype=jnp.float32) * 0.1
    teacher_b = jax.random.normal(k6, (T, 1, C), dtype=jnp.float32) * 0.01

    for dist_type in ("soft", "hard", "none"):
        loss = distillation_loss(
            x, outputs, outputs_kd, labels, teacher_w, teacher_b,
            alpha=alpha, tau=tau, distillation_type=dist_type)
        loss = jax.block_until_ready(loss)
        ref = reference_loss(
            x, outputs, outputs_kd, labels, teacher_w, teacher_b,
            alpha=alpha, tau=tau, distillation_type=dist_type)
        ref = jax.block_until_ready(ref)
        assert jnp.isfinite(loss), f"{dist_type}: loss is not finite"
        assert jnp.allclose(loss, ref, rtol=1e-3, atol=1e-3), (dist_type, loss, ref)

    print("KERNEL_OK")
</pallas_src>

<mosaic_0001>
module attributes {stable_mosaic.version = 11 : i64} {
  func.func @_fused_distill_kernel(%arg0: i32, %arg1: memref<8x1xi32, #tpu.memory_space<vmem>>, %arg2: memref<8x128xf32, #tpu.memory_space<vmem>>, %arg3: memref<8x128xf32, #tpu.memory_space<vmem>>, %arg4: memref<8x32xbf16, #tpu.memory_space<vmem>>, %arg5: memref<32x256xbf16, #tpu.memory_space<vmem>>, %arg6: memref<1x256xf32, #tpu.memory_space<vmem>>, %arg7: memref<1x128xf32, #tpu.memory_space<vmem>>, %arg8: memref<1x128xf32, #tpu.memory_space<vmem>>, %arg9: memref<1x128xf32, #tpu.memory_space<vmem>>, %arg10: memref<1x128xf32, #tpu.memory_space<vmem>>) attributes {dimension_semantics = [#tpu.dimension_semantics<arbitrary>], iteration_bounds = array<i64: 1>, scalar_prefetch = 0 : i64, scratch_operands = 3 : i64, tpu.core_type = #tpu.core_type<tc>, window_params = [{transform_indices = @transform_0, window_bounds = array<i64: 8, 1>}, {transform_indices = @transform_1, window_bounds = array<i64: 8, 128>}, {transform_indices = @transform_2, window_bounds = array<i64: 8, 128>}, {transform_indices = @transform_3, window_bounds = array<i64: 8, 32>}, {pipeline_mode = #tpu.pipeline_mode<synchronous>, transform_indices = @transform_4, window_bounds = array<i64: 32, 256>}, {pipeline_mode = #tpu.pipeline_mode<synchronous>, transform_indices = @transform_5, window_bounds = array<i64: 1, 256>}, {pipeline_mode = #tpu.pipeline_mode<synchronous>, transform_indices = @transform_6, window_bounds = array<i64: 1, 128>}]} {
    %c0_i32 = arith.constant 0 : i32
    %0 = arith.cmpi eq, %arg0, %c0_i32 : i32
    %1 = arith.extui %0 : i1 to i32
    %c0_i32_0 = arith.constant 0 : i32
    %2 = arith.cmpi ne, %1, %c0_i32_0 : i32
    scf.if %2 {
      %cst_55 = arith.constant 0.000000e+00 : f32
      %161 = vector.broadcast %cst_55 : f32 to vector<1x128xf32>
      %c0_56 = arith.constant 0 : index
      %c0_57 = arith.constant 0 : index
      %162 = vector.load %arg8[%c0_56, %c0_57] : memref<1x128xf32, #tpu.memory_space<vmem>>, vector<1x128xf32>
      tpu.vector_store %arg8[%c0_56, %c0_57], %161 {strides = array<i32>} : memref<1x128xf32, #tpu.memory_space<vmem>>, vector<1x128xf32>,
      %cst_58 = arith.constant 0.000000e+00 : f32
      %163 = vector.broadcast %cst_58 : f32 to vector<1x128xf32>
      %c0_59 = arith.constant 0 : index
      %c0_60 = arith.constant 0 : index
      %164 = vector.load %arg9[%c0_59, %c0_60] : memref<1x128xf32, #tpu.memory_space<vmem>>, vector<1x128xf32>
      tpu.vector_store %arg9[%c0_59, %c0_60], %163 {strides = array<i32>} : memref<1x128xf32, #tpu.memory_space<vmem>>, vector<1x128xf32>,
      %cst_61 = arith.constant 0.000000e+00 : f32
      %165 = vector.broadcast %cst_61 : f32 to vector<1x128xf32>
      %c0_62 = arith.constant 0 : index
      %c0_63 = arith.constant 0 : index
      %166 = vector.load %arg10[%c0_62, %c0_63] : memref<1x128xf32, #tpu.memory_space<vmem>>, vector<1x128xf32>
      tpu.vector_store %arg10[%c0_62, %c0_63], %165 {strides = array<i32>} : memref<1x128xf32, #tpu.memory_space<vmem>>, vector<1x128xf32>,
    } else {
    }
    %3 = tpu.iota {dimensions = array<i32: 1>} : vector<1x128xi32>
    %cst = arith.constant 0.000000e+00 : f32
    %4 = vector.broadcast %cst : f32 to vector<1x128xf32>
    %c0 = arith.constant 0 : index
    %c0_1 = arith.constant 0 : index
    %5 = vector.load %arg2[%c0, %c0_1] : memref<8x128xf32, #tpu.memory_space<vmem>>, vector<8x128xf32>
    %c0_2 = arith.constant 0 : index
    %c0_3 = arith.constant 0 : index
    %6 = vector.load %arg1[%c0_2, %c0_3] : memref<8x1xi32, #tpu.memory_space<vmem>>, vector<8x1xi32>
    %7 = tpu.iota {dimensions = array<i32: 1>} : vector<8x128xi32>
    %cst_4 = arith.constant dense<0xFF800000> : vector<8xf32>
    %8 = vector.multi_reduction <maximumf>, %5, %cst_4 [1] : vector<8x128xf32> to vector<8xf32>
    %9 = vector.shape_cast %8 : vector<8xf32> to vector<8x1xf32>
    %10 = vector.broadcast %9 : vector<8x1xf32> to vector<8x128xf32>
    %11 = arith.subf %5, %10 : vector<8x128xf32>
    %12 = math.exp %11 : vector<8x128xf32>
    %cst_5 = arith.constant dense<0.000000e+00> : vector<8xf32>
    %13 = vector.multi_reduction <add>, %12, %cst_5 [1] : vector<8x128xf32> to vector<8xf32>
    %14 = vector.shape_cast %13 : vector<8xf32> to vector<8x1xf32>
    %15 = math.log %14 : vector<8x1xf32>
    %16 = arith.addf %9, %15 : vector<8x1xf32>
    %17 = vector.broadcast %6 : vector<8x1xi32> to vector<8x128xi32>
    %18 = arith.cmpi eq, %7, %17 : vector<8x128xi32>
    %cst_6 = arith.constant 0.000000e+00 : f32
    %19 = vector.broadcast %cst_6 : f32 to vector<8x128xf32>
    %20 = arith.select %18, %5, %19 : vector<8x128xi1>, vector<8x128xf32>
    %cst_7 = arith.constant dense<0.000000e+00> : vector<8xf32>
    %21 = vector.multi_reduction <add>, %20, %cst_7 [1] : vector<8x128xf32> to vector<8xf32>
    %22 = vector.shape_cast %21 : vector<8xf32> to vector<8x1xf32>
    %23 = arith.subf %16, %22 : vector<8x1xf32>
    %24 = vector.shape_cast %23 : vector<8x1xf32> to vector<1x8x1xf32>
    %cst_8 = arith.constant dense<0.000000e+00> : vector<1xf32>
    %25 = vector.multi_reduction <add>, %24, %cst_8 [1, 2] : vector<1x8x1xf32> to vector<1xf32>
    %26 = vector.shape_cast %25 : vector<1xf32> to vector<1x1x1xf32>
    %27 = vector.extract %26[0, 0, 0] : f32 from vector<1x1x1xf32>
    %28 = vector.broadcast %27 : f32 to vector<1x1xf32>
    %c0_9 = arith.constant 0 : index
    %c0_10 = arith.constant 0 : index
    %29 = vector.load %arg8[%c0_9, %c0_10] : memref<1x128xf32, #tpu.memory_space<vmem>>, vector<1x128xf32>
    %c0_i32_11 = arith.constant 0 : i32
    %30 = vector.broadcast %c0_i32_11 : i32 to vector<1x128xi32>
    %31 = arith.cmpi eq, %3, %30 : vector<1x128xi32>
    %32 = vector.shape_cast %28 : vector<1x1xf32> to vector<1x1xf32>
    %33 = vector.broadcast %32 : vector<1x1xf32> to vector<1x128xf32>
    %34 = arith.select %31, %33, %4 : vector<1x128xi1>, vector<1x128xf32>
    %35 = arith.addf %29, %34 : vector<1x128xf32>
    %c0_12 = arith.constant 0 : index
    %c0_13 = arith.constant 0 : index
    %36 = vector.load %arg8[%c0_12, %c0_13] : memref<1x128xf32, #tpu.memory_space<vmem>>, vector<1x128xf32>
    tpu.vector_store %arg8[%c0_12, %c0_13], %35 {strides = array<i32>} : memref<1x128xf32, #tpu.memory_space<vmem>>, vector<1x128xf32>,
    %c0_14 = arith.constant 0 : index
    %c0_15 = arith.constant 0 : index
    %37 = vector.load %arg3[%c0_14, %c0_15] : memref<8x128xf32, #tpu.memory_space<vmem>>, vector<8x128xf32>
    %c0_16 = arith.constant 0 : index
    %c0_17 = arith.constant 0 : index
    %38 = vector.load %arg4[%c0_16, %c0_17] : memref<8x32xbf16, #tpu.memory_space<vmem>>, vector<8x32xbf16>
    %c0_18 = arith.constant 0 : index
    %c0_19 = arith.constant 0 : index
    %39 = vector.load %arg5[%c0_18, %c0_19] : memref<32x256xbf16, #tpu.memory_space<vmem>>, vector<32x256xbf16>
    %cst_20 = arith.constant dense<0.000000e+00> : vector<8x256xf32>
    %40 = tpu.matmul %38, %39, %cst_20 {dimension_numbers = #tpu.dot_dimension_numbers<[1], [0], [0], [1], [0, 0, 1, 1], [], []>} : vector<8x32xbf16>, vector<32x256xbf16>, vector<8x256xf32> -> vector<8x256xf32>
    %c0_21 = arith.constant 0 : index
    %c0_22 = arith.constant 0 : index
    %41 = vector.load %arg6[%c0_21, %c0_22] : memref<1x256xf32, #tpu.memory_space<vmem>>, vector<1x256xf32>
    %42 = vector.broadcast %41 : vector<1x256xf32> to vector<8x256xf32>
    %43 = arith.addf %40, %42 : vector<8x256xf32>
    %cst_23 = arith.constant dense<0xFF800000> : vector<8xf32>
    %44 = vector.multi_reduction <maximumf>, %37, %cst_23 [1] : vector<8x128xf32> to vector<8xf32>
    %45 = vector.shape_cast %44 : vector<8xf32> to vector<8x1xf32>
    %46 = vector.broadcast %45 : vector<8x1xf32> to vector<8x128xf32>
    %47 = arith.subf %37, %46 : vector<8x128xf32>
    %cst_24 = arith.constant 5.000000e-01 : f32
    %48 = vector.broadcast %cst_24 : f32 to vector<8x128xf32>
    %49 = arith.mulf %47, %48 : vector<8x128xf32>
    %50 = math.exp %49 : vector<8x128xf32>
    %cst_25 = arith.constant dense<0.000000e+00> : vector<8xf32>
    %51 = vector.multi_reduction <add>, %50, %cst_25 [1] : vector<8x128xf32> to vector<8xf32>
    %52 = vector.shape_cast %51 : vector<8xf32> to vector<8x1xf32>
    %53 = math.log %52 : vector<8x1xf32>
    %54 = vector.broadcast %53 : vector<8x1xf32> to vector<8x128xf32>
    %55 = arith.subf %49, %54 : vector<8x128xf32>
    %56 = vector.extract_strided_slice %43 {offsets = [0, 0], sizes = [8, 128], strides = [1, 1]} : vector<8x256xf32> to vector<8x128xf32>
    %cst_26 = arith.constant dense<0xFF800000> : vector<8xf32>
    %57 = vector.multi_reduction <maximumf>, %56, %cst_26 [1] : vector<8x128xf32> to vector<8xf32>
    %58 = vector.shape_cast %57 : vector<8xf32> to vector<8x1xf32>
    %59 = vector.broadcast %58 : vector<8x1xf32> to vector<8x128xf32>
    %60 = arith.subf %56, %59 : vector<8x128xf32>
    %61 = math.exp %60 : vector<8x128xf32>
    %cst_27 = arith.constant dense<0.000000e+00> : vector<8xf32>
    %62 = vector.multi_reduction <add>, %61, %cst_27 [1] : vector<8x128xf32> to vector<8xf32>
    %63 = vector.shape_cast %62 : vector<8xf32> to vector<8x1xf32>
    %64 = math.log %63 : vector<8x1xf32>
    %65 = arith.mulf %61, %60 : vector<8x128xf32>
    %cst_28 = arith.constant dense<0.000000e+00> : vector<8xf32>
    %66 = vector.multi_reduction <add>, %65, %cst_28 [1] : vector<8x128xf32> to vector<8xf32>
    %67 = vector.shape_cast %66 : vector<8xf32> to vector<8x1xf32>
    %68 = arith.divf %67, %63 : vector<8x1xf32>
    %69 = arith.subf %64, %68 : vector<8x1xf32>
    %70 = vector.shape_cast %69 : vector<8x1xf32> to vector<1x8x1xf32>
    %cst_29 = arith.constant dense<0.000000e+00> : vector<1xf32>
    %71 = vector.multi_reduction <add>, %70, %cst_29 [1, 2] : vector<1x8x1xf32> to vector<1xf32>
    %72 = vector.shape_cast %71 : vector<1xf32> to vector<1x1x1xf32>
    %73 = vector.extract %72[0, 0, 0] : f32 from vector<1x1x1xf32>
    %74 = vector.broadcast %73 : f32 to vector<1x1xf32>
    %c0_i32_30 = arith.constant 0 : i32
    %75 = vector.broadcast %c0_i32_30 : i32 to vector<1x128xi32>
    %76 = arith.cmpi eq, %3, %75 : vector<1x128xi32>
    %77 = vector.shape_cast %74 : vector<1x1xf32> to vector<1x1xf32>
    %78 = vector.broadcast %77 : vector<1x1xf32> to vector<1x128xf32>
    %79 = arith.select %76, %78, %4 : vector<1x128xi1>, vector<1x128xf32>
    %cst_31 = arith.constant 5.000000e-01 : f32
    %80 = vector.broadcast %cst_31 : f32 to vector<8x128xf32>
    %81 = arith.mulf %60, %80 : vector<8x128xf32>
    %82 = math.exp %81 : vector<8x128xf32>
    %cst_32 = arith.constant dense<0.000000e+00> : vector<8xf32>
    %83 = vector.multi_reduction <add>, %82, %cst_32 [1] : vector<8x128xf32> to vector<8xf32>
    %84 = vector.shape_cast %83 : vector<8xf32> to vector<8x1xf32>
    %85 = math.log %84 : vector<8x1xf32>
    %86 = vector.broadcast %85 : vector<8x1xf32> to vector<8x128xf32>
    %87 = arith.subf %81, %86 : vector<8x128xf32>
    %cst_33 = arith.constant 1.000000e+00 : f32
    %88 = vector.broadcast %cst_33 : f32 to vector<8x1xf32>
    %89 = arith.divf %88, %84 : vector<8x1xf32>
    %90 = vector.broadcast %89 : vector<8x1xf32> to vector<8x128xf32>
    %91 = arith.mulf %82, %90 : vector<8x128xf32>
    %92 = arith.subf %87, %55 : vector<8x128xf32>
    %93 = arith.mulf %91, %92 : vector<8x128xf32>
    %94 = vector.shape_cast %93 : vector<8x128xf32> to vector<1x8x128xf32>
    %cst_34 = arith.constant dense<0.000000e+00> : vector<1xf32>
    %95 = vector.multi_reduction <add>, %94, %cst_34 [1, 2] : vector<1x8x128xf32> to vector<1xf32>
    %96 = vector.shape_cast %95 : vector<1xf32> to vector<1x1x1xf32>
    %97 = vector.extract %96[0, 0, 0] : f32 from vector<1x1x1xf32>
    %98 = vector.broadcast %97 : f32 to vector<1x1xf32>
    %c0_i32_35 = arith.constant 0 : i32
    %99 = vector.broadcast %c0_i32_35 : i32 to vector<1x128xi32>
    %100 = arith.cmpi eq, %3, %99 : vector<1x128xi32>
    %101 = vector.shape_cast %98 : vector<1x1xf32> to vector<1x1xf32>
    %102 = vector.broadcast %101 : vector<1x1xf32> to vector<1x128xf32>
    %103 = arith.select %100, %102, %4 : vector<1x128xi1>, vector<1x128xf32>
    %104 = vector.extract_strided_slice %43 {offsets = [0, 128], sizes = [8, 128], strides = [1, 1]} : vector<8x256xf32> to vector<8x128xf32>
    %cst_36 = arith.constant dense<0xFF800000> : vector<8xf32>
    %105 = vector.multi_reduction <maximumf>, %104, %cst_36 [1] : vector<8x128xf32> to vector<8xf32>
    %106 = vector.shape_cast %105 : vector<8xf32> to vector<8x1xf32>
    %107 = vector.broadcast %106 : vector<8x1xf32> to vector<8x128xf32>
    %108 = arith.subf %104, %107 : vector<8x128xf32>
    %109 = math.exp %108 : vector<8x128xf32>
    %cst_37 = arith.constant dense<0.000000e+00> : vector<8xf32>
    %110 = vector.multi_reduction <add>, %109, %cst_37 [1] : vector<8x128xf32> to vector<8xf32>
    %111 = vector.shape_cast %110 : vector<8xf32> to vector<8x1xf32>
    %112 = math.log %111 : vector<8x1xf32>
    %113 = arith.mulf %109, %108 : vector<8x128xf32>
    %cst_38 = arith.constant dense<0.000000e+00> : vector<8xf32>
    %114 = vector.multi_reduction <add>, %113, %cst_38 [1] : vector<8x128xf32> to vector<8xf32>
    %115 = vector.shape_cast %114 : vector<8xf32> to vector<8x1xf32>
    %116 = arith.divf %115, %111 : vector<8x1xf32>
    %117 = arith.subf %112, %116 : vector<8x1xf32>
    %118 = vector.shape_cast %117 : vector<8x1xf32> to vector<1x8x1xf32>
    %cst_39 = arith.constant dense<0.000000e+00> : vector<1xf32>
    %119 = vector.multi_reduction <add>, %118, %cst_39 [1, 2] : vector<1x8x1xf32> to vector<1xf32>
    %120 = vector.shape_cast %119 : vector<1xf32> to vector<1x1x1xf32>
    %121 = vector.extract %120[0, 0, 0] : f32 from vector<1x1x1xf32>
    %122 = vector.broadcast %121 : f32 to vector<1x1xf32>
    %c1_i32 = arith.constant 1 : i32
    %123 = vector.broadcast %c1_i32 : i32 to vector<1x128xi32>
    %124 = arith.cmpi eq, %3, %123 : vector<1x128xi32>
    %125 = vector.shape_cast %122 : vector<1x1xf32> to vector<1x1xf32>
    %126 = vector.broadcast %125 : vector<1x1xf32> to vector<1x128xf32>
    %127 = arith.select %124, %126, %79 : vector<1x128xi1>, vector<1x128xf32>
    %cst_40 = arith.constant 5.000000e-01 : f32
    %128 = vector.broadcast %cst_40 : f32 to vector<8x128xf32>
    %129 = arith.mulf %108, %128 : vector<8x128xf32>
    %130 = math.exp %129 : vector<8x128xf32>
    %cst_41 = arith.constant dense<0.000000e+00> : vector<8xf32>
    %131 = vector.multi_reduction <add>, %130, %cst_41 [1] : vector<8x128xf32> to vector<8xf32>
    %132 = vector.shape_cast %131 : vector<8xf32> to vector<8x1xf32>
    %133 = math.log %132 : vector<8x1xf32>
    %134 = vector.broadcast %133 : vector<8x1xf32> to vector<8x128xf32>
    %135 = arith.subf %129, %134 : vector<8x128xf32>
    %cst_42 = arith.constant 1.000000e+00 : f32
    %136 = vector.broadcast %cst_42 : f32 to vector<8x1xf32>
    %137 = arith.divf %136, %132 : vector<8x1xf32>
    %138 = vector.broadcast %137 : vector<8x1xf32> to vector<8x128xf32>
    %139 = arith.mulf %130, %138 : vector<8x128xf32>
    %140 = arith.subf %135, %55 : vector<8x128xf32>
    %141 = arith.mulf %139, %140 : vector<8x128xf32>
    %142 = vector.shape_cast %141 : vector<8x128xf32> to vector<1x8x128xf32>
    %cst_43 = arith.constant dense<0.000000e+00> : vector<1xf32>
    %143 = vector.multi_reduction <add>, %142, %cst_43 [1, 2] : vector<1x8x128xf32> to vector<1xf32>
    %144 = vector.shape_cast %143 : vector<1xf32> to vector<1x1x1xf32>
    %145 = vector.extract %144[0, 0, 0] : f32 from vector<1x1x1xf32>
    %146 = vector.broadcast %145 : f32 to vector<1x1xf32>
    %c1_i32_44 = arith.constant 1 : i32
    %147 = vector.broadcast %c1_i32_44 : i32 to vector<1x128xi32>
    %148 = arith.cmpi eq, %3, %147 : vector<1x128xi32>
    %149 = vector.shape_cast %146 : vector<1x1xf32> to vector<1x1xf32>
    %150 = vector.broadcast %149 : vector<1x1xf32> to vector<1x128xf32>
    %151 = arith.select %148, %150, %103 : vector<1x128xi1>, vector<1x128xf32>
    %c0_45 = arith.constant 0 : index
    %c0_46 = arith.constant 0 : index
    %152 = vector.load %arg9[%c0_45, %c0_46] : memref<1x128xf32, #tpu.memory_space<vmem>>, vector<1x128xf32>
    %153 = arith.addf %152, %127 : vector<1x128xf32>
    %c0_47 = arith.constant 0 : index
    %c0_48 = arith.constant 0 : index
    %154 = vector.load %arg9[%c0_47, %c0_48] : memref<1x128xf32, #tpu.memory_space<vmem>>, vector<1x128xf32>
    tpu.vector_store %arg9[%c0_47, %c0_48], %153 {strides = array<i32>} : memref<1x128xf32, #tpu.memory_space<vmem>>, vector<1x128xf32>,
    %c0_49 = arith.constant 0 : index
    %c0_50 = arith.constant 0 : index
    %155 = vector.load %arg10[%c0_49, %c0_50] : memref<1x128xf32, #tpu.memory_space<vmem>>, vector<1x128xf32>
    %156 = arith.addf %155, %151 : vector<1x128xf32>
    %c0_51 = arith.constant 0 : index
    %c0_52 = arith.constant 0 : index
    %157 = vector.load %arg10[%c0_51, %c0_52] : memref<1x128xf32, #tpu.memory_space<vmem>>, vector<1x128xf32>
    tpu.vector_store %arg10[%c0_51, %c0_52], %156 {strides = array<i32>} : memref<1x128xf32, #tpu.memory_space<vmem>>, vector<1x128xf32>,
    %c0_i32_53 = arith.constant 0 : i32
    %158 = arith.cmpi eq, %arg0, %c0_i32_53 : i32
    %159 = arith.extui %158 : i1 to i32
    %c0_i32_54 = arith.constant 0 : i32
    %160 = arith.cmpi ne, %159, %c0_i32_54 : i32
    scf.if %160 {
      %c0_55 = arith.constant 0 : index
      %c0_56 = arith.constant 0 : index
      %161 = vector.load %arg8[%c0_55, %c0_56] : memref<1x128xf32, #tpu.memory_space<vmem>>, vector<1x128xf32>
      %162 = vector.shape_cast %161 : vector<1x128xf32> to vector<1x1x128xf32>
      %cst_57 = arith.constant dense<0.000000e+00> : vector<1xf32>
      %163 = vector.multi_reduction <add>, %162, %cst_57 [1, 2] : vector<1x1x128xf32> to vector<1xf32>
      %164 = vector.shape_cast %163 : vector<1xf32> to vector<1x1x1xf32>
      %165 = vector.extract %164[0, 0, 0] : f32 from vector<1x1x1xf32>
      %166 = vector.broadcast %165 : f32 to vector<1x1xf32>
      %cst_58 = arith.constant 8.000000e+00 : f32
      %167 = vector.broadcast %cst_58 : f32 to vector<1x1xf32>
      %168 = arith.divf %166, %167 : vector<1x1xf32>
      %c2_i32 = arith.constant 2 : i32
      %169 = vector.broadcast %c2_i32 : i32 to vector<1x128xi32>
      %170 = arith.cmpi slt, %3, %169 : vector<1x128xi32>
      %c0_59 = arith.constant 0 : index
      %c0_60 = arith.constant 0 : index
      %171 = vector.load %arg9[%c0_59, %c0_60] : memref<1x128xf32, #tpu.memory_space<vmem>>, vector<1x128xf32>
      %cst_61 = arith.constant -1.000000e+30 : f32
      %172 = vector.broadcast %cst_61 : f32 to vector<1x128xf32>
      %173 = arith.select %170, %171, %172 : vector<1x128xi1>, vector<1x128xf32>
      %174 = vector.shape_cast %173 : vector<1x128xf32> to vector<1x1x128xf32>
      %cst_62 = arith.constant dense<0xFF800000> : vector<1xf32>
      %175 = vector.multi_reduction <maximumf>, %174, %cst_62 [1, 2] : vector<1x1x128xf32> to vector<1xf32>
      %176 = vector.shape_cast %175 : vector<1xf32> to vector<1x1x1xf32>
      %177 = vector.extract %176[0, 0, 0] : f32 from vector<1x1x1xf32>
      %178 = vector.broadcast %177 : f32 to vector<1x1xf32>
      %179 = vector.broadcast %178 : vector<1x1xf32> to vector<1x128xf32>
      %180 = arith.subf %173, %179 : vector<1x128xf32>
      %181 = math.exp %180 : vector<1x128xf32>
      %cst_63 = arith.constant 0.000000e+00 : f32
      %182 = vector.broadcast %cst_63 : f32 to vector<1x128xf32>
      %183 = arith.select %170, %181, %182 : vector<1x128xi1>, vector<1x128xf32>
      %184 = vector.shape_cast %183 : vector<1x128xf32> to vector<1x1x128xf32>
      %cst_64 = arith.constant dense<0.000000e+00> : vector<1xf32>
      %185 = vector.multi_reduction <add>, %184, %cst_64 [1, 2] : vector<1x1x128xf32> to vector<1xf32>
      %186 = vector.shape_cast %185 : vector<1xf32> to vector<1x1x1xf32>
      %187 = vector.extract %186[0, 0, 0] : f32 from vector<1x1x1xf32>
      %188 = vector.broadcast %187 : f32 to vector<1x1xf32>
      %189 = vector.broadcast %188 : vector<1x1xf32> to vector<1x128xf32>
      %190 = arith.divf %183, %189 : vector<1x128xf32>
      %c0_65 = arith.constant 0 : index
      %c0_66 = arith.constant 0 : index
      %191 = vector.load %arg10[%c0_65, %c0_66] : memref<1x128xf32, #tpu.memory_space<vmem>>, vector<1x128xf32>
      %192 = arith.mulf %190, %191 : vector<1x128xf32>
      %193 = vector.shape_cast %192 : vector<1x128xf32> to vector<1x1x128xf32>
      %cst_67 = arith.constant dense<0.000000e+00> : vector<1xf32>
      %194 = vector.multi_reduction <add>, %193, %cst_67 [1, 2] : vector<1x1x128xf32> to vector<1xf32>
      %195 = vector.shape_cast %194 : vector<1xf32> to vector<1x1x1xf32>
      %196 = vector.extract %195[0, 0, 0] : f32 from vector<1x1x1xf32>
      %197 = vector.broadcast %196 : f32 to vector<1x1xf32>
      %cst_68 = arith.constant 3.906250e-03 : f32
      %198 = vector.broadcast %cst_68 : f32 to vector<1x1xf32>
      %199 = arith.mulf %197, %198 : vector<1x1xf32>
      %cst_69 = arith.constant 5.000000e-01 : f32
      %200 = vector.broadcast %cst_69 : f32 to vector<1x1xf32>
      %201 = arith.mulf %168, %200 : vector<1x1xf32>
      %cst_70 = arith.constant 5.000000e-01 : f32
      %202 = vector.broadcast %cst_70 : f32 to vector<1x1xf32>
      %203 = arith.mulf %199, %202 : vector<1x1xf32>
      %204 = arith.addf %201, %203 : vector<1x1xf32>
      %c0_i32_71 = arith.constant 0 : i32
      %205 = vector.broadcast %c0_i32_71 : i32 to vector<1x128xi32>
      %206 = arith.cmpi eq, %3, %205 : vector<1x128xi32>
      %207 = vector.shape_cast %204 : vector<1x1xf32> to vector<1x1xf32>
      %208 = vector.broadcast %207 : vector<1x1xf32> to vector<1x128xf32>
      %209 = arith.select %206, %208, %4 : vector<1x128xi1>, vector<1x128xf32>
      %c0_72 = arith.constant 0 : index
      %c0_73 = arith.constant 0 : index
      %210 = vector.load %arg7[%c0_72, %c0_73] : memref<1x128xf32, #tpu.memory_space<vmem>>, vector<1x128xf32>
      tpu.vector_store %arg7[%c0_72, %c0_73], %209 {strides = array<i32>} : memref<1x128xf32, #tpu.memory_space<vmem>>, vector<1x128xf32>,
    } else {
    }
    return
  }
  func.func @transform_0(%arg0: i32) -> (i32, i32) {
    %c0_i32 = arith.constant 0 : i32
    %c0_i32_0 = arith.constant 0 : i32
    return %arg0, %c0_i32 : i32, i32
  }
  func.func @transform_1(%arg0: i32) -> (i32, i32) {
    %c0_i32 = arith.constant 0 : i32
    %c0_i32_0 = arith.constant 0 : i32
    return %arg0, %c0_i32 : i32, i32
  }
  func.func @transform_2(%arg0: i32) -> (i32, i32) {
    %c0_i32 = arith.constant 0 : i32
    %c0_i32_0 = arith.constant 0 : i32
    return %arg0, %c0_i32 : i32, i32
  }
  func.func @transform_3(%arg0: i32) -> (i32, i32) {
    %c0_i32 = arith.constant 0 : i32
    %c0_i32_0 = arith.constant 0 : i32
    return %arg0, %c0_i32 : i32, i32
  }
  func.func @transform_4(%arg0: i32) -> (i32, i32) {
    %c0_i32 = arith.constant 0 : i32
    %c0_i32_0 = arith.constant 0 : i32
    %c0_i32_1 = arith.constant 0 : i32
    return %c0_i32, %c0_i32_0 : i32, i32
  }
  func.func @transform_5(%arg0: i32) -> (i32, i32) {
    %c0_i32 = arith.constant 0 : i32
    %c0_i32_0 = arith.constant 0 : i32
    %c0_i32_1 = arith.constant 0 : i32
    return %c0_i32, %c0_i32_0 : i32, i32
  }
  func.func @transform_6(%arg0: i32) -> (i32, i32) {
    %c0_i32 = arith.constant 0 : i32
    %c0_i32_0 = arith.constant 0 : i32
    %c0_i32_1 = arith.constant 0 : i32
    return %c0_i32, %c0_i32_0 : i32, i32
  }
}

</mosaic_0001>

<bundles_post_ra>
// kernel: tpu_custom_call.1
= control target key start
LH: loop header
LB: loop body
LE: loop exit
PB: predicated region body
PF: predicated region fallthrough
CT: control target
= control target key end

     0   :  { %11 = vsyncpa [#allocation6], 0  ;;  %s864_s0 = inlined_call_operand.hbm [shape: s32[8,1], index: 0, kind: input, shape index: {}]   ;;  %s865_s1 = inlined_call_operand.hbm [shape: f32[8,128], index: 1, kind: input, shape index: {}]   ;;  %s866_s2 = inlined_call_operand.hbm [shape: f32[8,128], index: 2, kind: input, shape index: {}]   ;;  %s867_s3 = inlined_call_operand.hbm [shape: bf16[8,32], index: 3, kind: input, shape index: {}]   ;;  %s868_s4 = inlined_call_operand.hbm [shape: bf16[32,256], index: 4, kind: input, shape index: {}]   ;;  %s869_s5 = inlined_call_operand.hbm [shape: f32[1,256], index: 5, kind: input, shape index: {}]   ;;  %s870_s6 = inlined_call_operand.hbm [shape: f32[1,128], index: 6, kind: output, shape index: {}]  }
   0x1   :  { %12 = vsyncpa [#allocation9], 0 }
   0x2   :  { %13 = vsyncpa [#allocation12], 0 }
   0x3   :  { %14 = vsyncpa [#allocation15], 0 }
   0x4   :  { %15 = vsyncpa [#allocation7], 0  ;;  %s673_s21 = smov [#allocation8]   ;;  %s674_s23 = smov [#allocation11]  }
   0x5   :  { %s32_s22 = sshll.u32 %s673_s21, 4  ;;  %s52_s24 = sshll.u32 %s674_s23, 4  ;;  %s33_s22 = int_to_ptr.vmem [resolvable:$true] %s32_s22  ;;  %s53_s24 = int_to_ptr.vmem [resolvable:$true] %s52_s24 }
   0x6   :  { %s509_s27 = scalar_lea.hbm %s865_s1, 128 }
   0x7   :  { %p510_p0 = scmp.ne.s32.totalorder %s865_s1, %s509_s27  ;;  %p513_p1 = scmp.lt.u32.totalorder %s509_s27, %s865_s1 }
   0x9   :  { %p515_p2 = pnand %p513_p1, %p510_p0 }
   0xb   :  { %518 = shalt.err (!%p515_p2)
}
   0xc   :  { %s519_s8 = scalar_lea.vmem %s33_s22, 128  ;;  %p524_p4 = scmp.lt.s32.totalorder %s33_s22, %s33_s22 }
   0xd   :  { %p520_p3 = scmp.ne.s32.totalorder %s33_s22, %s519_s8  ;;  %p525_p5 = scmp.lt.s32.totalorder %s519_s8, %s519_s8 }
   0xf   :  { %p526_p6 = por %p525_p5, %p524_p4 }
  0x11   :  { %p527_p7 = pnand %p526_p6, %p520_p3 }
  0x13   :  { %530 = shalt.err (!%p527_p7)
}
  0x14   :  { %35 = dma.hbm_to_vmem [thread:$0]  %s865_s1, 128, %s33_s22, [#allocation9]  }
  0x15   :  { %s531_s13 = scalar_lea.hbm %s867_s3, 64 }
  0x16   :  { %p532_p8 = scmp.ne.s32.totalorder %s867_s3, %s531_s13  ;;  %p535_p9 = scmp.lt.u32.totalorder %s531_s13, %s867_s3 }
  0x18   :  { %p537_p10 = pnand %p535_p9, %p532_p8 }
  0x1a   :  { %540 = shalt.err (!%p537_p10)
}
  0x1b   :  { %s541_s18 = scalar_lea.vmem %s53_s24, 64  ;;  %p546_p12 = scmp.lt.s32.totalorder %s53_s24, %s53_s24 }
  0x1c   :  { %p542_p11 = scmp.ne.s32.totalorder %s53_s24, %s541_s18  ;;  %p547_p13 = scmp.lt.s32.totalorder %s541_s18, %s541_s18 }
  0x1e   :  { %p548_p0 = por %p547_p13, %p546_p12 }
  0x20   :  { %p549_p1 = pnand %p548_p0, %p542_p11 }
  0x22   :  { %552 = shalt.err (!%p549_p1)
}
  0x23   :  { %55 = dma.hbm_to_vmem [thread:$0]  %s867_s3, 64, %s53_s24, [#allocation12]  }
  0x24   :  { %s675_s20 = smov [#allocation5]   ;;  %s676_s22 = smov [#allocation10]  }
  0x25   :  { %s22_s21 = sshll.u32 %s675_s20, 4  ;;  %s42_s23 = sshll.u32 %s676_s22, 4  ;;  %s23_s21 = int_to_ptr.vmem [resolvable:$true] %s22_s21  ;;  %s43_s23 = int_to_ptr.vmem [resolvable:$true] %s42_s23 }
  0x26   :  { %s553_s27 = scalar_lea.hbm %s864_s0, 128 }
  0x27   :  { %p554_p2 = scmp.ne.s32.totalorder %s864_s0, %s553_s27  ;;  %p557_p3 = scmp.lt.u32.totalorder %s553_s27, %s864_s0 }
  0x29   :  { %p559_p4 = pnand %p557_p3, %p554_p2 }
  0x2b   :  { %562 = shalt.err (!%p559_p4)
}
  0x2c   :  { %s563_s3 = scalar_lea.vmem %s23_s21, 128  ;;  %p568_p6 = scmp.lt.s32.totalorder %s23_s21, %s23_s21 }
  0x2d   :  { %p564_p5 = scmp.ne.s32.totalorder %s23_s21, %s563_s3  ;;  %p569_p7 = scmp.lt.s32.totalorder %s563_s3, %s563_s3 }
  0x2f   :  { %p570_p8 = por %p569_p7, %p568_p6 }
  0x31   :  { %p571_p9 = pnand %p570_p8, %p564_p5 }
  0x33   :  { %574 = shalt.err (!%p571_p9)
}
  0x34   :  { %25 = dma.hbm_to_vmem [thread:$0]  %s864_s0, 128, %s23_s21, [#allocation6]  }
  0x35   :  { %s575_s11 = scalar_lea.hbm %s866_s2, 128 }
  0x36   :  { %p576_p10 = scmp.ne.s32.totalorder %s866_s2, %s575_s11  ;;  %p579_p11 = scmp.lt.u32.totalorder %s575_s11, %s866_s2 }
  0x38   :  { %p581_p12 = pnand %p579_p11, %p576_p10 }
  0x3a   :  { %584 = shalt.err (!%p581_p12)
}
  0x3b   :  { %s585_s16 = scalar_lea.vmem %s43_s23, 128  ;;  %p590_p0 = scmp.lt.s32.totalorder %s43_s23, %s43_s23 }
  0x3c   :  { %p586_p13 = scmp.ne.s32.totalorder %s43_s23, %s585_s16  ;;  %p591_p1 = scmp.lt.s32.totalorder %s585_s16, %s585_s16 }
  0x3e   :  { %p592_p2 = por %p591_p1, %p590_p0 }
  0x40   :  { %p593_p3 = pnand %p592_p2, %p586_p13 }
  0x42   :  { %596 = shalt.err (!%p593_p3)
}
  0x43   :  { %45 = dma.hbm_to_vmem [thread:$0]  %s866_s2, 128, %s43_s23, [#allocation9]  }
  0x44   :  { %s677_s18 = smov [#allocation13]   ;;  %s597_s21 = scalar_lea.hbm %s868_s4, 512 }
  0x45   :  { %s61_s1 = sshll.u32 %s677_s18, 4  ;;  %p598_p4 = scmp.ne.s32.totalorder %s868_s4, %s597_s21  ;;  %s62_s1 = int_to_ptr.vmem [resolvable:$true] %s61_s1 }
  0x46   :  { %p601_p5 = scmp.lt.u32.totalorder %s597_s21, %s868_s4 }
  0x48   :  { %p603_p6 = pnand %p601_p5, %p598_p4 }
  0x4a   :  { %606 = shalt.err (!%p603_p6)
}
  0x4b   :  { %s607_s28 = scalar_lea.vmem %s62_s1, 512  ;;  %p612_p8 = scmp.lt.s32.totalorder %s62_s1, %s62_s1 }
  0x4c   :  { %p608_p7 = scmp.ne.s32.totalorder %s62_s1, %s607_s28  ;;  %p613_p9 = scmp.lt.s32.totalorder %s607_s28, %s607_s28 }
  0x4e   :  { %p614_p10 = por %p613_p9, %p612_p8 }
  0x50   :  { %p615_p11 = pnand %p614_p10, %p608_p7 }
  0x52   :  { %618 = shalt.err (!%p615_p11)
}
  0x53   :  { %s678_s2 = smov 128   ;;  %s679_s23 = smov 8  }
  0x54   :  { %67 = dma.hbm_to_vmem [thread:$0]  %s868_s4, 512, %s62_s1, [#allocation12], %s678_s2, %s678_s2, %s679_s23  }
  0x55   :  { %s680_s7 = smov [#allocation14]   ;;  %s619_s9 = scalar_lea.hbm %s869_s5, 32 }
  0x56   :  { %s74_s3 = sshll.u32 %s680_s7, 4  ;;  %p620_p12 = scmp.ne.s32.totalorder %s869_s5, %s619_s9  ;;  %s75_s3 = int_to_ptr.vmem [resolvable:$true] %s74_s3 }
  0x57   :  { %p623_p13 = scmp.lt.u32.totalorder %s619_s9, %s869_s5 }
  0x59   :  { %p625_p0 = pnand %p623_p13, %p620_p12 }
  0x5b   :  { %628 = shalt.err (!%p625_p0)
}
  0x5c   :  { %s629_s14 = scalar_lea.vmem %s75_s3, 32  ;;  %p634_p2 = scmp.lt.s32.totalorder %s75_s3, %s75_s3 }
  0x5d   :  { %p630_p1 = scmp.ne.s32.totalorder %s75_s3, %s629_s14  ;;  %p635_p3 = scmp.lt.s32.totalorder %s629_s14, %s629_s14 }
  0x5f   :  { %p636_p4 = por %p635_p3, %p634_p2 }
  0x61   :  { %p637_p5 = pnand %p636_p4, %p630_p1 }
  0x63   :  { %640 = shalt.err (!%p637_p5)
}
  0x64   :  { %77 = dma.hbm_to_vmem [thread:$0]  %s869_s5, 32, %s75_s3, [#allocation15]  }
  0x65   :  { %663 = dma.done.wait [#allocation6], 128  }
  0x66   :  { %664 = vsyncadd [#allocation6], 4294967168 }
  0x67   :  { %665 = dma.done.wait [#allocation9], 256  }
  0x68   :  { %666 = vsyncadd [#allocation9], 4294967040 }
  0x69   :  { %667 = dma.done.wait [#allocation12], 576  }
  0x6a   :  { %668 = vsyncadd [#allocation12], 4294966720 }
  0x6b   :  { %669 = dma.done.wait [#allocation15], 32  }
  0x6c   :  { %670 = vsyncadd [#allocation15], 4294967264  ;;  %v681_v0 = vmov 0   ;;  %v467_v1 = vld [vmem:[#allocation13 + $0x4] ss:$8 sps:$4 sm:$0xff]   ;;  %v143_v6 = vld [vmem:[#allocation10] sm:$0xff]  ;;  %v104_v10 = vlaneseq }
  0x6d   :  { %217 = vmatprep.mubr.bf16.mxu0 %v681_v0  ;;  %466 = vset.pattern.permute.xlu0 %v681_v0  ;;  %v469_v2 = vld [vmem:[#allocation13] ss:$8 sps:$4 sm:$0xff]   ;;  %v470_v3 = vld [vmem:[#allocation13 + $0x14] ss:$8 sps:$4 sm:$0xff]   ;;  %v472_v4 = vld [vmem:[#allocation13 + $0x10] ss:$8 sps:$4 sm:$0xff]  }
  0x6e   :  { %185 = vmatprep.subr.bf16.mxu0 %v467_v1  ;;  %v791_v5 = vld [vmem:[#allocation8] sm:$0xff]  ;;  %226 = vmax.xlane.f32.xlu0 %v143_v6  ;;  %v144_v7 = vld [vmem:[#allocation11] sm:$0xf]  ;;  %vm181_vm0 = vcmask 261120   ;;  %v152_v13 = vshrl.u32 %v104_v10, 7  ;;  %v107_v30 = vld [vmem:[#allocation5] sm:$0xff] }
  0x6f   :  { %186 = vmatpush1.bf16.msra.mxu0 %v469_v2  ;;  %108 = vmax.xlane.f32.xlu1 %v791_v5  ;;  %v149_v17 = vld [vmem:[#allocation14] sm:$0x3]  ;;  %v804_v43 = vand.u32 127, %v104_v10  ;;  %vm126_vm2 = vcmask 7168   ;;  %vm350_vm5 = vcmask 1040384   ;;  %s683_s22 = smov [#allocation16]  }
  0x70   :  { %187 = vmatprep.subr.bf16.mxu0 %v470_v3  ;;  %v153_v16 = vsub.s32 0, %v152_v13  ;;  %v157_v18 = vsub.s32 1, %v152_v13  ;;  %s420_s25 = sshll.u32 %s683_s22, 4  ;;  %s421_s25 = int_to_ptr.vmem [resolvable:$true] %s420_s25 }
  0x71   :  { %vm138_vm3 = vcmp.eq.s32.totalorder %v804_v43, 0  ;;  %vm313_vm4 = vcmp.eq.s32.totalorder %v804_v43, 1  ;;  %vm364_vm6 = vcmp.lt.s32.totalorder %v804_v43, 2  ;;  %s641_s26 = scalar_lea.vmem %s421_s25, 16  ;;  %s645_s27 = scalar_lea.vmem %s421_s25, 32 }
  0x72   :  { %v154_v20 = vrot.slane %v149_v17, %v153_v16  ;;  %v158_v21 = vrot.slane %v149_v17, %v157_v18  ;;  %p642_p6 = scmp.ne.s32.totalorder %s421_s25, %s641_s26  ;;  %p646_p7 = scmp.lt.s32.totalorder %s421_s25, %s421_s25 }
  0x73   :  { %188 = vmatpush1.bf16.msra.mxu0 %v472_v4  ;;  %p647_p8 = scmp.lt.s32.totalorder %s645_s27, %s641_s26 }
  0x75   :  { %p648_p9 = por %p647_p8, %p646_p7 }
  0x76   :  { %436 = vmatmul.mubr.msk.bf16.vlgmr.msra.gmra.mrb[0].mxu0 %vm181_vm0, %v144_v7 }
  0x77   :  { %p649_p10 = pnand %p648_p9, %p642_p6 }
  0xfb   :  { %v227_v9 = vpop.xlane.xlu0 %226 }
  0xfc   :  { %v794_v8 = vpop.xlane.xlu1 %108  ;;  %v228_v12 = vsub.f32 %v143_v6, %v227_v9 }
  0xfd   :  { %v110_v11 = vsub.f32 %v791_v5, %v794_v8 }
  0xfe   :  { %v798_v15 = vmul.f32 0.5, %v228_v12 }
  0xff   :  { %v111_v14 = vmul.f32 1.442695, %v110_v11 }
 0x100   :  { %v230_v19 = vmul.f32 1.442695, %v798_v15 }
 0x101   :  { %473 = vpow2.f32 %v111_v14 }
 0x102   :  { %475 = vpow2.f32 %v230_v19 }
 0x10b   :  { %v474_v28 = vpop.eup %473 }
 0x10c   :  { %v476_v29 = vpop.eup %475 }
 0x149   :  { %v219_v22 = vpop.f32.mrb[0].mxu0 }
 0x14a   :  { %v220_v23 = vadd.f32 %v219_v22, %v154_v20  ;;  %v221_v24 = vpop.f32.mrb[1].mxu0  ;;  %v682_v22 = vmov 0.0  }
 0x14b   :  { %v222_v25 = vadd.f32 %v221_v24, %v158_v21  ;;  %v223_v26 = vpop.f32.mrb[2].mxu0  ;;  %101 = vst [vmem:[#allocation2] sm:$0x1] %v682_v22  ;;  %102 = vst [vmem:[#allocation3] sm:$0x1] %v682_v22 }
 0x14c   :  { %v224_v27 = vpop.f32.mrb[3].mxu0  ;;  %237 = vmax.xlane.f32.xlu0 %v220_v23  ;;  %103 = vst [vmem:[#allocation4] sm:$0x1] %v682_v22 }
 0x14d   :  { %288 = vmax.xlane.f32.xlu1 %v222_v25 }
 0x151   :  { %113 = vadd.xlane.f32.xlu1 %v474_v28 }
 0x155   :  { %232 = vadd.xlane.f32.xlu1 %v476_v29 }
 0x162   :  { %119 = vperm.xlu0 %466, %v107_v30  }
 0x1d9   :  { %v238_v31 = vpop.xlane.xlu0 %237 }
 0x1da   :  { %v239_v32 = vsub.f32 %v220_v23, %v238_v31  ;;  %v289_v33 = vpop.xlane.xlu1 %288 }
 0x1db   :  { %v290_v37 = vsub.f32 %v222_v25, %v289_v33 }
 0x1dc   :  { %v240_v34 = vmul.f32 1.442695, %v239_v32  ;;  %v801_v35 = vmul.f32 0.5, %v239_v32 }
 0x1dd   :  { %v291_v38 = vmul.f32 1.442695, %v290_v37  ;;  %v808_v60 = vmul.f32 0.5, %v290_v37 }
 0x1de   :  { %477 = vpow2.f32 %v240_v34  ;;  %v265_v36 = vmul.f32 1.442695, %v801_v35  ;;  %v114_v47 = vpop.xlane.xlu1 %113 }
 0x1df   :  { %v317_v6 = vmul.f32 1.442695, %v808_v60 }
 0x1e0   :  { %479 = vpow2.f32 %v265_v36 }
 0x1e1   :  { %481 = vpow2.f32 %v291_v38  ;;  %v120_v44 = vpop.permute.xlu0 %119 }
 0x1e2   :  { %vm121_vm1 = vcmp.eq.s32.totalorder %v804_v43, %v120_v44  ;;  %v233_v48 = vpop.xlane.xlu1 %232  ;;  %483 = vlog2.f32 %v114_v47 }
 0x1e3   :  { %v122_v46 = vsel %vm121_vm1, %v791_v5, 0.0 }
 0x1e8   :  { %v478_v39 = vpop.eup %477 }
 0x1e9   :  { %242 = vadd.xlane.f32.xlu1 %v478_v39  ;;  %v246_v42 = vmul.f32 %v478_v39, %v239_v32 }
 0x1ea   :  { %v480_v40 = vpop.eup %479 }
 0x1eb   :  { %v482_v41 = vpop.eup %481 }
 0x1ec   :  { %v297_v45 = vmul.f32 %v482_v41, %v290_v37  ;;  %v484_v52 = vpop.eup %483 }
 0x1ed   :  { %267 = vadd.xlane.f32.xlu1 %v480_v40  ;;  %v116_v56 = vmul.f32 0.6931472, %v484_v52  ;;  %v137_v52 = vld [vmem:[#allocation2] sm:$0x1] }
 0x1ef   :  { %v117_v0 = vadd.f32 %v116_v56, %v794_v8 }
 0x1f1   :  { %293 = vadd.xlane.f32.xlu1 %v482_v41 }
 0x1f5   :  { %247 = vadd.xlane.f32.xlu1 %v246_v42 }
 0x1f9   :  { %298 = vadd.xlane.f32.xlu1 %v297_v45 }
 0x1fd   :  { %123 = vadd.xlane.f32.xlu1 %v122_v46 }
 0x276   :  { %v243_v49 = vpop.xlane.xlu1 %242 }
 0x277   :  { %485 = vlog2.f32 %v243_v49 }
 0x27a   :  { %v268_v50 = vpop.xlane.xlu1 %267 }
 0x27b   :  { %487 = vlog2.f32 %v268_v50 }
 0x27c   :  { %489 = vrcp.f32 %v243_v49 }
 0x27d   :  { %491 = vlog2.f32 %v233_v48 }
 0x27e   :  { %v294_v51 = vpop.xlane.xlu1 %293 }
 0x27f   :  { %493 = vlog2.f32 %v294_v51 }
 0x280   :  { %495 = vrcp.f32 %v294_v51 }
 0x281   :  { %v486_v54 = vpop.eup %485  ;;  %497 = vrcp.f32 %v268_v50 }
 0x282   :  { %v248_v53 = vpop.xlane.xlu1 %247  ;;  %v245_v1 = vmul.f32 0.6931472, %v486_v54  ;;  %499 = vpow2.f32 %v317_v6 }
 0x285   :  { %v488_v55 = vpop.eup %487 }
 0x286   :  { %v490_v57 = vpop.eup %489  ;;  %v299_v58 = vpop.xlane.xlu1 %298  ;;  %v270_v61 = vmul.f32 0.6931472, %v488_v55 }
 0x287   :  { %v492_v59 = vpop.eup %491  ;;  %v250_v63 = vmul.f32 %v490_v57, %v248_v53 }
 0x288   :  { %v235_v3 = vmul.f32 0.6931472, %v492_v59  ;;  %v271_v10 = vsub.f32 %v801_v35, %v270_v61  ;;  %v340_v61 = vld [vmem:[#allocation3] sm:$0x1] }
 0x289   :  { %v494_v62 = vpop.eup %493  ;;  %v251_v13 = vsub.f32 %v245_v1, %v250_v63 }
 0x28a   :  { %v496_v2 = vpop.eup %495  ;;  %v124_v4 = vpop.xlane.xlu1 %123  ;;  %v296_v5 = vmul.f32 0.6931472, %v494_v62  ;;  %v814_v14 = vsub.f32 %v798_v15, %v235_v3 }
 0x28b   :  { %v301_v7 = vmul.f32 %v496_v2, %v299_v58  ;;  %v125_v9 = vsub.f32 %v117_v0, %v124_v4  ;;  %v498_v8 = vpop.eup %497  ;;  %v252_v18 = vsel %vm126_vm2, %v251_v13, 0.0 }
 0x28c   :  { %v275_v17 = vsub.f32 %v271_v10, %v814_v14  ;;  %v274_v19 = vmul.f32 %v498_v8, %v480_v40  ;;  %v817_v21 = vpop.eup %499 }
 0x28d   :  { %v127_v11 = vsel %vm126_vm2, %v125_v9, 0.0  ;;  %v302_v12 = vsub.f32 %v296_v5, %v301_v7 }
 0x28e   :  { %128 = vadd.xlane.f32.xlu1 %v127_v11  ;;  %v276_v20 = vmul.f32 %v275_v17, %v274_v19 }
 0x28f   :  { %v303_v16 = vsel %vm126_vm2, %v302_v12, 0.0 }
 0x290   :  { %304 = vadd.xlane.f32.xlu0 %v303_v16 }
 0x292   :  { %253 = vadd.xlane.f32.xlu1 %v252_v18 }
 0x296   :  { %277 = vadd.xlane.f32.xlu1 %v276_v20 }
 0x29a   :  { %319 = vadd.xlane.f32.xlu1 %v817_v21 }
 0x31b   :  { %v129_v15 = vpop.xlane.xlu1 %128 }
 0x31c   :  { %v130_v23 = vrot.slane %v129_v15, 4 }
 0x31d   :  { %v305_v24 = vpop.xlane.xlu0 %304 }
 0x31e   :  { %v131_v25 = vadd.f32 %v130_v23, %v129_v15  ;;  %v306_v26 = vrot.slane %v305_v24, 4 }
 0x31f   :  { %v254_v27 = vpop.xlane.xlu1 %253 }
 0x320   :  { %v132_v28 = vrot.slane %v131_v25, 2  ;;  %v307_v29 = vadd.f32 %v306_v26, %v305_v24  ;;  %v255_v30 = vrot.slane %v254_v27, 4 }
 0x322   :  { %v256_v31 = vadd.f32 %v255_v30, %v254_v27  ;;  %v133_v32 = vadd.f32 %v132_v28, %v131_v25  ;;  %v308_v33 = vrot.slane %v307_v29, 2 }
 0x323   :  { %v278_v34 = vpop.xlane.xlu1 %277 }
 0x324   :  { %v257_v35 = vrot.slane %v256_v31, 2  ;;  %v279_v36 = vrot.slane %v278_v34, 4  ;;  %v134_v37 = vrot.slane %v133_v32, 1  ;;  %v309_v41 = vadd.f32 %v308_v33, %v307_v29 }
 0x326   :  { %v280_v38 = vadd.f32 %v279_v36, %v278_v34  ;;  %v135_v39 = vadd.f32 %v134_v37, %v133_v32  ;;  %v258_v40 = vadd.f32 %v257_v35, %v256_v31  ;;  %v310_v47 = vrot.slane %v309_v41, 1  ;;  %v343_v32 = vld [vmem:[#allocation4] sm:$0x1] }
 0x327   :  { %v320_v51 = vpop.xlane.xlu1 %319 }
 0x328   :  { %v281_v42 = vrot.slane %v280_v38, 2  ;;  %437 = vpush %v135_v39  ;;  %v259_v44 = vrot.slane %v258_v40, 1  ;;  %v311_v50 = vadd.f32 %v310_v47, %v309_v41  ;;  %501 = vlog2.f32 %v320_v51 }
 0x329   :  { %503 = vrcp.f32 %v320_v51 }
 0x32a   :  { %v260_v45 = vadd.f32 %v259_v44, %v258_v40  ;;  %v282_v46 = vadd.f32 %v281_v42, %v280_v38 }
 0x32c   :  { %439 = vpush %v260_v45  ;;  %v283_v48 = vrot.slane %v282_v46, 1 }
 0x32e   :  { %v284_v49 = vadd.f32 %v283_v48, %v282_v46 }
 0x330   :  { %441 = vpush %v284_v49 }
 0x331   :  { %443 = vpush %v311_v50 }
 0x332   :  { %v502_v53 = vpop.eup %501 }
 0x333   :  { %v322_v57 = vmul.f32 0.6931472, %v502_v53  ;;  %v504_v0 = vpop.eup %503 }
 0x335   :  { %v323_v59 = vsub.f32 %v808_v60, %v322_v57  ;;  %v326_v60 = vmul.f32 %v504_v0, %v817_v21 }
 0x337   :  { %v327_v4 = vsub.f32 %v323_v59, %v814_v14 }
 0x339   :  { %v328_v6 = vmul.f32 %v327_v4, %v326_v60 }
 0x359   :  { %s438_s5 = spop %437 }
 0x35a   :  { %v139_v54 = vstv %s438_s5 }
 0x35b   :  { %v140_v55 = vsel %vm138_vm3, %v139_v54, 0.0 }
 0x35c   :  { %v141_v56 = vadd.f32 %v140_v55, %v137_v52 }
 0x35d   :  { %s440_s16 = spop %439 }
 0x35e   :  { %142 = vst [vmem:[#allocation2] sm:$0x1] %v141_v56  ;;  %v262_v58 = vstv %s440_s16 }
 0x35f   :  { %v263_v62 = vsel %vm138_vm3, %v262_v58, 0.0 }
 0x361   :  { %s823_s0 = spop %441 }
 0x362   :  { %s444_s17 = spop %443  ;;  %v286_v31 = vstv %s823_s0 }
 0x363   :  { %v314_v63 = vstv %s444_s17  ;;  %v287_v33 = vsel %vm138_vm3, %v286_v31, 0.0 }
 0x364   :  { %v315_v1 = vsel %vm313_vm4, %v314_v63, %v263_v62 }
 0x365   :  { %v341_v2 = vadd.f32 %v340_v61, %v315_v1  ;;  %v349_v3 = vld [vmem:[#allocation2] sm:$0x1] }
 0x366   :  { %v351_v5 = vsel %vm350_vm5, %v349_v3, 0.0 }
 0x367   :  { %342 = vst [vmem:[#allocation3] sm:$0x1] %v341_v2  ;;  %352 = vadd.xlane.f32.xlu1 %v351_v5 }
 0x36b   :  { %329 = vadd.xlane.f32.xlu1 %v328_v6 }
 0x36e   :  { %v365_v7 = vld [vmem:[#allocation3] sm:$0x1] }
 0x36f   :  { %v366_v9 = vsel %vm364_vm6, %v365_v7, -1e+30 }
 0x370   :  { %v367_v10 = vsel %vm350_vm5, %v366_v9, -inf }
 0x371   :  { %368 = vmax.xlane.f32.xlu1 %v367_v10 }
 0x3f4   :  { %v353_v11 = vpop.xlane.xlu1 %352 }
 0x3f5   :  { %v354_v12 = vrot.slane %v353_v11, 4 }
 0x3f7   :  { %v355_v13 = vadd.f32 %v354_v12, %v353_v11 }
 0x3f8   :  { %v330_v14 = vpop.xlane.xlu1 %329 }
 0x3f9   :  { %v356_v8 = vrot.slane %v355_v13, 2  ;;  %v331_v16 = vrot.slane %v330_v14, 4 }
 0x3fb   :  { %v332_v17 = vadd.f32 %v331_v16, %v330_v14  ;;  %v357_v18 = vadd.f32 %v356_v8, %v355_v13 }
 0x3fd   :  { %v333_v19 = vrot.slane %v332_v17, 2  ;;  %v358_v15 = vrot.slane %v357_v18, 1 }
 0x3fe   :  { %v369_v20 = vpop.xlane.xlu1 %368 }
 0x3ff   :  { %v370_v21 = vrot.slane %v369_v20, 4  ;;  %v334_v22 = vadd.f32 %v333_v19, %v332_v17  ;;  %v359_v27 = vadd.f32 %v358_v15, %v357_v18 }
 0x401   :  { %v371_v23 = vmax.f32 %v369_v20, %v370_v21  ;;  %v335_v24 = vrot.slane %v334_v22, 1 }
 0x403   :  { %v372_v25 = vrot.slane %v371_v23, 2  ;;  %v336_v26 = vadd.f32 %v335_v24, %v334_v22 }
 0x405   :  { %445 = vpush %v336_v26  ;;  %v373_v28 = vmax.f32 %v371_v23, %v372_v25 }
 0x406   :  { %447 = vpush %v359_v27 }
 0x407   :  { %v374_v29 = vrot.slane %v373_v28, 1 }
 0x409   :  { %v375_v30 = vmax.f32 %v373_v28, %v374_v29 }
 0x40b   :  { %449 = vpush %v375_v30 }
 0x436   :  { %s446_s18 = spop %445 }
 0x437   :  { %v338_v34 = vstv %s446_s18  ;;  %s843_s1 = spop %447 }
 0x438   :  { %v339_v35 = vsel %vm313_vm4, %v338_v34, %v287_v33  ;;  %v361_v1 = vstv %s843_s1 }
 0x439   :  { %v344_v36 = vadd.f32 %v343_v32, %v339_v35  ;;  %v363_v2 = vmul.f32 0.125, %v361_v1 }
 0x43b   :  { %345 = vst [vmem:[#allocation4] sm:$0x1] %v344_v36  ;;  %v409_v5 = vmul.f32 0.5, %v363_v2 }
 0x43c   :  { %s450_s19 = spop %449 }
 0x43d   :  { %v377_v37 = vstv %s450_s19 }
 0x43e   :  { %v378_v38 = vsub.f32 %v366_v9, %v377_v37 }
 0x440   :  { %v379_v39 = vmul.f32 1.442695, %v378_v38 }
 0x442   :  { %505 = vpow2.f32 %v379_v39  ;;  %v395_v54 = vld [vmem:[#allocation4] sm:$0x1] }
 0x44c   :  { %v506_v40 = vpop.eup %505 }
 0x44d   :  { %v381_v41 = vsel %vm364_vm6, %v506_v40, 0.0 }
 0x44e   :  { %v382_v42 = vsel %vm350_vm5, %v381_v41, 0.0 }
 0x44f   :  { %383 = vadd.xlane.f32.xlu1 %v382_v42 }
 0x4dc   :  { %v384_v44 = vpop.xlane.xlu1 %383 }
 0x4dd   :  { %v385_v45 = vrot.slane %v384_v44, 4 }
 0x4df   :  { %v386_v46 = vadd.f32 %v385_v45, %v384_v44 }
 0x4e1   :  { %v387_v47 = vrot.slane %v386_v46, 2 }
 0x4e3   :  { %v388_v48 = vadd.f32 %v387_v47, %v386_v46 }
 0x4e5   :  { %v389_v49 = vrot.slane %v388_v48, 1 }
 0x4e7   :  { %v390_v50 = vadd.f32 %v389_v49, %v388_v48 }
 0x4e9   :  { %451 = vpush %v390_v50 }
 0x51a   :  { %s452_s20 = spop %451 }
 0x51b   :  { %v392_v51 = vstv %s452_s20 }
 0x51c   :  { %507 = vrcp.f32 %v392_v51 }
 0x526   :  { %v508_v52 = vpop.eup %507 }
 0x527   :  { %v394_v53 = vmul.f32 %v508_v52, %v381_v41 }
 0x529   :  { %v396_v55 = vmul.f32 %v395_v54, %v394_v53 }
 0x52b   :  { %v397_v56 = vsel %vm350_vm5, %v396_v55, 0.0 }
 0x52c   :  { %398 = vadd.xlane.f32.xlu1 %v397_v56 }
 0x5b9   :  { %v399_v57 = vpop.xlane.xlu1 %398 }
 0x5ba   :  { %v400_v58 = vrot.slane %v399_v57, 4 }
 0x5bc   :  { %v401_v59 = vadd.f32 %v400_v58, %v399_v57 }
 0x5be   :  { %v402_v61 = vrot.slane %v401_v59, 2 }
 0x5c0   :  { %v403_v62 = vadd.f32 %v402_v61, %v401_v59 }
 0x5c2   :  { %v404_v63 = vrot.slane %v403_v62, 1 }
 0x5c4   :  { %v405_v0 = vadd.f32 %v404_v63, %v403_v62 }
 0x5c6   :  { %453 = vpush %v405_v0 }
 0x5f7   :  { %s454_s21 = spop %453 }
 0x5f8   :  { %v407_v3 = vstv %s454_s21 }
 0x5f9   :  { %v408_v4 = vmul.f32 0.00390625, %v407_v3 }
 0x5fb   :  { %v410_v60 = vmul.f32 0.5, %v408_v4 }
 0x5fd   :  { %v411_v6 = vadd.f32 %v410_v60, %v409_v5 }
 0x5ff   :  { %v412_v7 = vsel %vm138_vm3, %v411_v6, 0.0 }
 0x600   :  { %413 = vst [vmem:[#allocation16] sm:$0x1] %v412_v7 }
 0x601   :  { %652 = shalt.err (!%p649_p10)
}
 0x602   :  { %s653_s23 = scalar_lea.hbm %s870_s6, 16 }
 0x603   :  { %p654_p11 = scmp.ne.s32.totalorder %s870_s6, %s653_s23  ;;  %p657_p12 = scmp.lt.u32.totalorder %s653_s23, %s870_s6 }
 0x605   :  { %p659_p13 = pnand %p657_p12, %p654_p11 }
 0x607   :  { %662 = shalt.err (!%p659_p13)
}
 0x608   :  { %423 = dma.vmem_to_hbm [thread:$0]  %s421_s25, 16, %s870_s6, [#allocation7]  }
 0x609   :  { %671 = dma.done.wait [#allocation7], 16  }
 0x60a   :  { %672 = vsyncadd [#allocation7], 4294967280 }
 0x60b   :  { %427 = vsyncpa [#allocation6], 1 }
 0x60c   :  { %428 = vsyncpa [#allocation9], 1 }
 0x60d   :  { %429 = vsyncpa [#allocation12], 1 }
 0x60e   :  { %430 = vsyncpa [#allocation15], 1 }
 0x60f   :  { %431 = vsyncpa [#allocation7], 1 }

</bundles_post_ra>
